<compile_context>
chip_gen: v7x
topology: tpu7x:2x2x1
jax: 0.10.0
libtpu: 0.0.40
codegen_flags: <defaults>
</compile_context>

<pallas_src>
import functools

import jax
import jax.numpy as jnp
from jax.experimental import pallas as pl
from jax.experimental.pallas import tpu as pltpu


def _rms_norm_kernel(x_ref, w_ref, o_ref, *, eps, seg_bounds, inv_denoms):
    # x_ref: (TB, L) block of flattened (batch, D*C) rows
    # w_ref: (1, L)  flattened per-(row, channel) affine weight (ones if not affine)
    x = x_ref[...].astype(jnp.float32)                     # (TB, L)
    w = w_ref[...].astype(jnp.float32)                     # (1, L)
    sq = x * x

    lane = jax.lax.broadcasted_iota(jnp.int32, x.shape, dimension=1)
    scale = jnp.zeros_like(x)                              # per-element inverse sigma
    for (start, stop), inv_d in zip(seg_bounds, inv_denoms):
        m = jnp.logical_and(lane >= start, lane < stop)    # (TB, L) segment mask
        sumsq = jnp.sum(jnp.where(m, sq, 0.0), axis=-1, keepdims=True)   # (TB, 1)
        inv_sigma = jax.lax.rsqrt(sumsq * inv_d + eps)                   # (TB, 1)
        scale = scale + jnp.where(m, inv_sigma, 0.0)       # scatter onto segment lanes

    o_ref[...] = (x * scale * w).astype(o_ref.dtype)


def layer_rms_norm(x, weight, irrep_dims, *, eps, scaled=True, affine=True,
                   block_rows=512):
    """Pallas implementation of RefLayerRMSNorm.forward.

    x:      (N, D, C) with D = sum(irrep_dims)
    weight: (K, C) per-irrep, per-channel affine weight (ignored if not affine)
    """
    N, D, C = x.shape
    K = len(irrep_dims)
    assert sum(irrep_dims) == D
    L = D * C

    # Flatten so segments become contiguous lane ranges of length dk*C.
    x2d = x.reshape(N, L)

    # Compile-time segment bounds (in flattened lanes) and 1/denominators.
    seg_bounds = []
    off = 0
    for dk in irrep_dims:
        seg_bounds.append((off, off + int(dk) * C))
        off += int(dk) * C
    seg_bounds = tuple(seg_bounds)
    inv_denoms = tuple(1.0 / float(dk * C if scaled else C) for dk in irrep_dims)

    # Per-element affine weight, flattened to (1, L).
    if affine:
        rows = [jnp.tile(weight[k].astype(jnp.float32)[None, :], (int(dk), 1))
                for k, dk in enumerate(irrep_dims)]
        wflat = jnp.concatenate(rows, axis=0).reshape(1, L)
    else:
        wflat = jnp.ones((1, L), jnp.float32)

    # Batch-block size: multiple of 8 (or the full N) so block shapes are legal.
    tb = max(1, min(block_rows, N))
    if tb < N:
        tb = min(((tb + 7) // 8) * 8, N)
    grid = (pl.cdiv(N, tb),)

    kernel = functools.partial(_rms_norm_kernel, eps=float(eps),
                               seg_bounds=seg_bounds, inv_denoms=inv_denoms)

    dtype_bytes = jnp.dtype(x.dtype).itemsize
    cost = pl.CostEstimate(
        flops=int(5 * N * L),                 # square, mask-sum, scale, affine
        transcendentals=int(N * K),           # rsqrt per (batch, irrep)
        bytes_accessed=int(2 * N * L * dtype_bytes + L * 4),
    )

    out2d = pl.pallas_call(
        kernel,
        out_shape=jax.ShapeDtypeStruct((N, L), x.dtype),
        grid_spec=pltpu.PrefetchScalarGridSpec(
            num_scalar_prefetch=0,
            grid=grid,
            in_specs=[
                pl.BlockSpec((tb, L), lambda n: (n, 0)),   # x rows (batch-blocked)
                pl.BlockSpec((1, L), lambda n: (0, 0)),    # affine weight (replicated)
            ],
            out_specs=pl.BlockSpec((tb, L), lambda n: (n, 0)),
        ),
        compiler_params=pltpu.CompilerParams(
            dimension_semantics=("parallel",)),
        cost_estimate=cost,
    )(x2d, wflat)

    return out2d.reshape(N, D, C)


def layer_rms_norm_ref(x, weight, irrep_dims, *, eps, scaled=True, affine=True):
    """Pure-JAX reference mirroring the PyTorch module."""
    N, D, C = x.shape
    outs = []
    off = 0
    for k, dk in enumerate(irrep_dims):
        x_k = x[:, off:off + dk, :]
        off += dk
        sum_sq = jnp.sum(x_k.astype(jnp.float32) ** 2, axis=(1, 2))   # (N,)
        denom = dk * C if scaled else C
        var = sum_sq / denom
        sigma = jnp.sqrt(var + eps)
        normed = x_k / sigma[:, None, None]
        if affine:
            normed = normed * weight[k][None, None, :]
        outs.append(normed)
    return jnp.concatenate(outs, axis=1).astype(x.dtype)


if __name__ == "__main__":
    # Irreps l=0,1,2 -> dims 1, 3, 5 (D = 9); channels = 32; batch = 2.
    irrep_dims = (1, 3, 5)
    N, C = 2, 32
    D = sum(irrep_dims)
    K = len(irrep_dims)
    eps = 1e-5
    affine = True
    scaled = True

    key = jax.random.PRNGKey(0)
    kx, kw = jax.random.split(key)
    x = jax.random.normal(kx, (N, D, C), dtype=jnp.float32)
    # Module inits weight to ones; perturb deterministically so the affine path is exercised.
    weight = jnp.ones((K, C), jnp.float32) + 0.1 * jax.random.normal(kw, (K, C), jnp.float32)

    out = layer_rms_norm(x, weight, irrep_dims, eps=eps, scaled=scaled, affine=affine)
    out = jax.block_until_ready(out)

    ref = layer_rms_norm_ref(x, weight, irrep_dims, eps=eps, scaled=scaled, affine=affine)
    assert out.shape == (N, D, C)
    assert jnp.allclose(out, ref, atol=1e-5, rtol=1e-5), "mismatch vs reference"

    print("KERNEL_OK")
</pallas_src>

<mosaic_0001>
module attributes {stable_mosaic.version = 11 : i64} {
  func.func @_rms_norm_kernel(%arg0: i32, %arg1: memref<2x288xf32, #tpu.memory_space<vmem>>, %arg2: memref<1x288xf32, #tpu.memory_space<vmem>>, %arg3: memref<2x288xf32, #tpu.memory_space<vmem>>) attributes {dimension_semantics = [#tpu.dimension_semantics<parallel>], iteration_bounds = array<i64: 1>, scalar_prefetch = 0 : i64, scratch_operands = 0 : i64, tpu.core_type = #tpu.core_type<tc>, window_params = [{transform_indices = @transform_0, window_bounds = array<i64: 2, 288>}, {pipeline_mode = #tpu.pipeline_mode<synchronous>, transform_indices = @transform_1, window_bounds = array<i64: 1, 288>}, {transform_indices = @transform_2, window_bounds = array<i64: 2, 288>}]} {
    %c0 = arith.constant 0 : index
    %c0_0 = arith.constant 0 : index
    %0 = vector.load %arg1[%c0, %c0_0] : memref<2x288xf32, #tpu.memory_space<vmem>>, vector<2x288xf32>
    %c0_1 = arith.constant 0 : index
    %c0_2 = arith.constant 0 : index
    %1 = vector.load %arg2[%c0_1, %c0_2] : memref<1x288xf32, #tpu.memory_space<vmem>>, vector<1x288xf32>
    %2 = arith.mulf %0, %0 : vector<2x288xf32>
    %3 = tpu.iota {dimensions = array<i32: 1>} : vector<2x288xi32>
    %cst = arith.constant 0.000000e+00 : f32
    %4 = vector.broadcast %cst : f32 to vector<2x288xf32>
    %c0_i32 = arith.constant 0 : i32
    %5 = vector.broadcast %c0_i32 : i32 to vector<2x288xi32>
    %6 = arith.cmpi sge, %3, %5 : vector<2x288xi32>
    %c32_i32 = arith.constant 32 : i32
    %7 = vector.broadcast %c32_i32 : i32 to vector<2x288xi32>
    %8 = arith.cmpi slt, %3, %7 : vector<2x288xi32>
    %9 = arith.andi %6, %8 : vector<2x288xi1>
    %cst_3 = arith.constant 0.000000e+00 : f32
    %10 = vector.broadcast %cst_3 : f32 to vector<2x288xf32>
    %11 = arith.select %9, %2, %10 : vector<2x288xi1>, vector<2x288xf32>
    %cst_4 = arith.constant dense<0.000000e+00> : vector<2xf32>
    %12 = vector.multi_reduction <add>, %11, %cst_4 [1] : vector<2x288xf32> to vector<2xf32>
    %13 = vector.shape_cast %12 : vector<2xf32> to vector<2x1xf32>
    %cst_5 = arith.constant 3.125000e-02 : f32
    %14 = vector.broadcast %cst_5 : f32 to vector<2x1xf32>
    %15 = arith.mulf %13, %14 : vector<2x1xf32>
    %cst_6 = arith.constant 9.99999974E-6 : f32
    %16 = vector.broadcast %cst_6 : f32 to vector<2x1xf32>
    %17 = arith.addf %15, %16 : vector<2x1xf32>
    %18 = math.rsqrt %17 : vector<2x1xf32>
    %cst_7 = arith.constant 0.000000e+00 : f32
    %19 = vector.shape_cast %18 : vector<2x1xf32> to vector<2x1xf32>
    %20 = vector.broadcast %19 : vector<2x1xf32> to vector<2x288xf32>
    %21 = vector.broadcast %cst_7 : f32 to vector<2x288xf32>
    %22 = arith.select %9, %20, %21 : vector<2x288xi1>, vector<2x288xf32>
    %23 = arith.addf %4, %22 : vector<2x288xf32>
    %c32_i32_8 = arith.constant 32 : i32
    %24 = vector.broadcast %c32_i32_8 : i32 to vector<2x288xi32>
    %25 = arith.cmpi sge, %3, %24 : vector<2x288xi32>
    %c128_i32 = arith.constant 128 : i32
    %26 = vector.broadcast %c128_i32 : i32 to vector<2x288xi32>
    %27 = arith.cmpi slt, %3, %26 : vector<2x288xi32>
    %28 = arith.andi %25, %27 : vector<2x288xi1>
    %cst_9 = arith.constant 0.000000e+00 : f32
    %29 = vector.broadcast %cst_9 : f32 to vector<2x288xf32>
    %30 = arith.select %28, %2, %29 : vector<2x288xi1>, vector<2x288xf32>
    %cst_10 = arith.constant dense<0.000000e+00> : vector<2xf32>
    %31 = vector.multi_reduction <add>, %30, %cst_10 [1] : vector<2x288xf32> to vector<2xf32>
    %32 = vector.shape_cast %31 : vector<2xf32> to vector<2x1xf32>
    %cst_11 = arith.constant 0.010416667 : f32
    %33 = vector.broadcast %cst_11 : f32 to vector<2x1xf32>
    %34 = arith.mulf %32, %33 : vector<2x1xf32>
    %cst_12 = arith.constant 9.99999974E-6 : f32
    %35 = vector.broadcast %cst_12 : f32 to vector<2x1xf32>
    %36 = arith.addf %34, %35 : vector<2x1xf32>
    %37 = math.rsqrt %36 : vector<2x1xf32>
    %cst_13 = arith.constant 0.000000e+00 : f32
    %38 = vector.shape_cast %37 : vector<2x1xf32> to vector<2x1xf32>
    %39 = vector.broadcast %38 : vector<2x1xf32> to vector<2x288xf32>
    %40 = vector.broadcast %cst_13 : f32 to vector<2x288xf32>
    %41 = arith.select %28, %39, %40 : vector<2x288xi1>, vector<2x288xf32>
    %42 = arith.addf %23, %41 : vector<2x288xf32>
    %c128_i32_14 = arith.constant 128 : i32
    %43 = vector.broadcast %c128_i32_14 : i32 to vector<2x288xi32>
    %44 = arith.cmpi sge, %3, %43 : vector<2x288xi32>
    %c288_i32 = arith.constant 288 : i32
    %45 = vector.broadcast %c288_i32 : i32 to vector<2x288xi32>
    %46 = arith.cmpi slt, %3, %45 : vector<2x288xi32>
    %47 = arith.andi %44, %46 : vector<2x288xi1>
    %cst_15 = arith.constant 0.000000e+00 : f32
    %48 = vector.broadcast %cst_15 : f32 to vector<2x288xf32>
    %49 = arith.select %47, %2, %48 : vector<2x288xi1>, vector<2x288xf32>
    %cst_16 = arith.constant dense<0.000000e+00> : vector<2xf32>
    %50 = vector.multi_reduction <add>, %49, %cst_16 [1] : vector<2x288xf32> to vector<2xf32>
    %51 = vector.shape_cast %50 : vector<2xf32> to vector<2x1xf32>
    %cst_17 = arith.constant 6.250000e-03 : f32
    %52 = vector.broadcast %cst_17 : f32 to vector<2x1xf32>
    %53 = arith.mulf %51, %52 : vector<2x1xf32>
    %cst_18 = arith.constant 9.99999974E-6 : f32
    %54 = vector.broadcast %cst_18 : f32 to vector<2x1xf32>
    %55 = arith.addf %53, %54 : vector<2x1xf32>
    %56 = math.rsqrt %55 : vector<2x1xf32>
    %cst_19 = arith.constant 0.000000e+00 : f32
    %57 = vector.shape_cast %56 : vector<2x1xf32> to vector<2x1xf32>
    %58 = vector.broadcast %57 : vector<2x1xf32> to vector<2x288xf32>
    %59 = vector.broadcast %cst_19 : f32 to vector<2x288xf32>
    %60 = arith.select %47, %58, %59 : vector<2x288xi1>, vector<2x288xf32>
    %61 = arith.addf %42, %60 : vector<2x288xf32>
    %62 = arith.mulf %0, %61 : vector<2x288xf32>
    %63 = vector.broadcast %1 : vector<1x288xf32> to vector<2x288xf32>
    %64 = arith.mulf %62, %63 : vector<2x288xf32>
    %c0_20 = arith.constant 0 : index
    %c0_21 = arith.constant 0 : index
    %65 = vector.load %arg3[%c0_20, %c0_21] : memref<2x288xf32, #tpu.memory_space<vmem>>, vector<2x288xf32>
    tpu.vector_store %arg3[%c0_20, %c0_21], %64 {strides = array<i32>} : memref<2x288xf32, #tpu.memory_space<vmem>>, vector<2x288xf32>,
    return
  }
  func.func @transform_0(%arg0: i32) -> (i32, i32) {
    %c0_i32 = arith.constant 0 : i32
    %c0_i32_0 = arith.constant 0 : i32
    return %arg0, %c0_i32 : i32, i32
  }
  func.func @transform_1(%arg0: i32) -> (i32, i32) {
    %c0_i32 = arith.constant 0 : i32
    %c0_i32_0 = arith.constant 0 : i32
    %c0_i32_1 = arith.constant 0 : i32
    return %c0_i32, %c0_i32_0 : i32, i32
  }
  func.func @transform_2(%arg0: i32) -> (i32, i32) {
    %c0_i32 = arith.constant 0 : i32
    %c0_i32_0 = arith.constant 0 : i32
    return %arg0, %c0_i32 : i32, i32
  }
}

</mosaic_0001>

<bundles_post_ra>
// kernel: tpu_custom_call.1
= control target key start
LH: loop header
LB: loop body
LE: loop exit
PB: predicated region body
PF: predicated region fallthrough
CT: control target
= control target key end

     0   :  { %7 = vsyncpa [#allocation3], 0  ;;  %s321_s0 = inlined_call_operand.hbm [shape: f32[2,288], index: 0, kind: input, shape index: {}]   ;;  %s322_s1 = inlined_call_operand.vmem [shape: f32[1,288], index: 1, kind: input, shape index: {}]   ;;  %s323_s2 = inlined_call_operand.hbm [shape: f32[2,288], index: 2, kind: output, shape index: {}]  }
   0x1   :  { %8 = vsyncpa [#allocation4], 0  ;;  %s266_s9 = smov [#allocation2]   ;;  %s218_s13 = scalar_lea.hbm %s321_s0, 96 }
   0x2   :  { %s15_s10 = sshll.u32 %s266_s9, 4  ;;  %p219_p0 = scmp.ne.s32.totalorder %s321_s0, %s218_s13  ;;  %s16_s10 = int_to_ptr.vmem [resolvable:$true] %s15_s10 }
   0x3   :  { %p222_p1 = scmp.lt.u32.totalorder %s218_s13, %s321_s0 }
   0x5   :  { %p224_p2 = pnand %p222_p1, %p219_p0 }
   0x7   :  { %227 = shalt.err (!%p224_p2)
}
   0x8   :  { %s228_s18 = scalar_lea.vmem %s16_s10, 96  ;;  %p233_p4 = scmp.lt.s32.totalorder %s16_s10, %s16_s10 }
   0x9   :  { %p229_p3 = scmp.ne.s32.totalorder %s16_s10, %s228_s18  ;;  %p234_p5 = scmp.lt.s32.totalorder %s228_s18, %s228_s18 }
   0xb   :  { %p235_p6 = por %p234_p5, %p233_p4 }
   0xd   :  { %p236_p7 = pnand %p235_p6, %p229_p3 }
   0xf   :  { %239 = shalt.err (!%p236_p7)
}
  0x10   :  { %18 = dma.hbm_to_vmem [thread:$0]  %s321_s0, 96, %s16_s10, [#allocation3]  }
  0x11   :  { %262 = dma.done.wait [#allocation3], 96  }
  0x12   :  { %263 = vsyncadd [#allocation3], 4294967200  ;;  %v27_v0 = vlaneseq  ;;  %v267_v1 = vmov 1983009808   ;;  %v24_v7 = vld [vmem:[#allocation2] sm:$0x3f] }
  0x13   :  { %v43_v2 = vunpack.c.l.s4 %v267_v1  ;;  %v26_v9 = vmul.f32 %v24_v7, %v24_v7  ;;  %vm63_vm2 = vcmask 1041408   ;;  %vm67_vm3 = vcmask 254976   ;;  %v25_v33 = vld [vmem:[%s322_s1] sm:$0x7]  ;;  %s268_s1 = smov [#allocation5]  }
  0x14   :  { %v46_v3 = vshrl.u32 %v27_v0, 7  ;;  %v28_v5 = vand.u32 127, %v27_v0  ;;  %vm189_vm5 = vcmask 1043458   ;;  %vm191_vm7 = vcmask 259076   ;;  %s200_s22 = sshll.u32 %s268_s1, 4  ;;  %s201_s22 = int_to_ptr.vmem [resolvable:$true] %s200_s22 }
  0x15   :  { %v44_v4 = vunpack.c.0.s8 %v43_v2  ;;  %v41_v11 = vcombine.high %v26_v9, %v26_v9  ;;  %vm190_vm6 = vmor %vm189_vm5, %vm63_vm2  ;;  %s240_s23 = scalar_lea.vmem %s201_s22, 96  ;;  %p245_p9 = scmp.lt.s32.totalorder %s201_s22, %s201_s22 }
  0x16   :  { %v30_v8 = vadd.s32 256, %v28_v5  ;;  %vm34_vm0 = vcmp.lt.s32.totalorder %v28_v5, 32  ;;  %vm81_vm1 = vcmp.ge.s32.totalorder %v28_v5, 32  ;;  %v161_v31 = vsub.s32 0, %v46_v3  ;;  %vm192_vm8 = vmor %vm191_vm7, %vm190_vm6  ;;  %p241_p8 = scmp.ne.s32.totalorder %s201_s22, %s240_s23  ;;  %p246_p10 = scmp.lt.s32.totalorder %s240_s23, %s240_s23 }
  0x17   :  { %v47_v6 = vsub.s32 %v44_v4, %v46_v3  ;;  %v165_v32 = vsub.s32 1, %v46_v3  ;;  %v169_v36 = vsub.s32 2, %v46_v3 }
  0x18   :  { %vm114_vm4 = vcmp.lt.s32.totalorder %v30_v8, 288  ;;  %v162_v34 = vrot.slane %v25_v33, %v161_v31  ;;  %p247_p11 = por %p246_p10, %p245_p9 }
  0x19   :  { %v48_v10 = vrot.slane %v26_v9, %v47_v6  ;;  %v55_v14 = vrot.slane %v41_v11, %v47_v6  ;;  %v166_v35 = vrot.slane %v25_v33, %v165_v32  ;;  %v170_v39 = vrot.slane %v25_v33, %v169_v36 }
  0x1a   :  { %p248_p12 = pnand %p247_p11, %p241_p8 }
  0x1b   :  { %v60_v12 = vsel %vm34_vm0, %v48_v10, 0.0  ;;  %v90_v13 = vsel %vm81_vm1, %v48_v10, 0.0  ;;  %v56_v15 = vcombine.high %v48_v10, %v48_v10  ;;  %v120_v17 = vsel %vm114_vm4, %v55_v14, 0.0 }
  0x1c   :  { %v64_v16 = vsel %vm63_vm2, %v60_v12, 0.0  ;;  %v93_v19 = vsel %vm63_vm2, %v90_v13, 0.0  ;;  %v124_v20 = vsel %vm67_vm3, %v120_v17, 0.0  ;;  %v171_v40 = vcombine.low %v162_v34, %v166_v35 }
  0x1d   :  { %70 = vadd.xlane.f32.xlu0 %v64_v16  ;;  %v122_v18 = vsel %vm63_vm2, %v56_v15, 0.0  ;;  %v185_v49 = vrot.slane %v170_v39, %v47_v6 }
  0x1e   :  { %v125_v21 = vadd.f32 %v124_v20, %v122_v18  ;;  %v178_v48 = vrot.slane %v171_v40, %v47_v6 }
  0x20   :  { %126 = vadd.xlane.f32.xlu1 %v125_v21  ;;  %v186_v52 = vcombine.low %v178_v48, %v185_v49 }
  0x21   :  { %98 = vadd.xlane.f32.xlu0 %v93_v19 }
  0xaa   :  { %v71_v22 = vpop.xlane.xlu0 %70 }
  0xab   :  { %v72_v23 = vmul.f32 0.03125, %v71_v22 }
  0xad   :  { %v73_v24 = vadd.f32 1e-05, %v72_v23  ;;  %v127_v26 = vpop.xlane.xlu1 %126 }
  0xae   :  { %v99_v25 = vpop.xlane.xlu0 %98  ;;  %v128_v28 = vmul.f32 0.00625, %v127_v26 }
  0xaf   :  { %v100_v27 = vmul.f32 0.010416667, %v99_v25  ;;  %212 = vrsqrt.f32 %v73_v24 }
  0xb0   :  { %v129_v30 = vadd.f32 1e-05, %v128_v28 }
  0xb1   :  { %v101_v29 = vadd.f32 1e-05, %v100_v27 }
  0xb3   :  { %214 = vrsqrt.f32 %v101_v29 }
  0xb4   :  { %216 = vrsqrt.f32 %v129_v30 }
  0xb9   :  { %v213_v37 = vpop.eup %212 }
  0xba   :  { %v75_v42 = vsel %vm34_vm0, %v213_v37, 0.0 }
  0xbd   :  { %v215_v38 = vpop.eup %214 }
  0xbe   :  { %v217_v41 = vpop.eup %216  ;;  %v103_v43 = vsel %vm81_vm1, %v215_v38, 0.0 }
  0xbf   :  { %v106_v44 = vadd.f32 %v103_v43, %v75_v42  ;;  %v133_v45 = vsel %vm114_vm4, %v217_v41, 0.0 }
  0xc0   :  { %v154_v47 = vrot.slane %v133_v45, %v47_v6 }
  0xc1   :  { %v140_v46 = vcombine.low %v106_v44, %v217_v41 }
  0xc3   :  { %v147_v50 = vrot.slane %v140_v46, %v47_v6 }
  0xc5   :  { %v155_v51 = vcombine.low %v147_v50, %v154_v47 }
  0xc7   :  { %v157_v53 = vmul.f32 %v155_v51, %v24_v7 }
  0xc9   :  { %v188_v54 = vmul.f32 %v186_v52, %v157_v53 }
  0xcb   :  { %193 = vst.msk [vmem:[#allocation5] sm:$0x3f] %vm192_vm8, %v188_v54 }
  0xcc   :  { %251 = shalt.err (!%p248_p12)
}
  0xcd   :  { %s252_s26 = scalar_lea.hbm %s323_s2, 96 }
  0xce   :  { %p253_p13 = scmp.ne.s32.totalorder %s323_s2, %s252_s26  ;;  %p256_p0 = scmp.lt.u32.totalorder %s252_s26, %s323_s2 }
  0xd0   :  { %p258_p1 = pnand %p256_p0, %p253_p13 }
  0xd2   :  { %261 = shalt.err (!%p258_p1)
}
  0xd3   :  { %203 = dma.vmem_to_hbm [thread:$0]  %s201_s22, 96, %s323_s2, [#allocation4]  }
  0xd4   :  { %264 = dma.done.wait [#allocation4], 96  }
  0xd5   :  { %265 = vsyncadd [#allocation4], 4294967200 }
  0xd6   :  { %207 = vsyncpa [#allocation3], 1 }
  0xd7   :  { %208 = vsyncpa [#allocation4], 1 }

</bundles_post_ra>
